<compile_context>
chip_gen: v7x
topology: tpu7x:2x2x1
jax: 0.10.0
libtpu: 0.0.40
codegen_flags: <defaults>
</compile_context>

<pallas_src>
import jax
import jax.numpy as jnp
from jax.experimental import pallas as pl
from jax.experimental.pallas import tpu as pltpu


def _round_up(x: int, m: int) -> int:
    return ((x + m - 1) // m) * m


def _laban_reg_kernel(x_ref, w1_ref, b1_ref, w2_ref, b2_ref, o_ref):
    # x_ref:  (TB, D) f32  -- batch tile (sublanes) x features (lanes)
    # w1_ref: (D, H)  f32  -- VMEM-resident across all grid steps
    # b1_ref: (1, H)  f32
    # w2_ref: (H, O)  f32  -- VMEM-resident across all grid steps
    # b2_ref: (1, O)  f32
    # o_ref:  (TB, O) f32
    h = jnp.dot(x_ref[...], w1_ref[...], preferred_element_type=jnp.float32)
    h = jnp.maximum(h + b1_ref[...], 0.0)
    out = jnp.dot(h, w2_ref[...], preferred_element_type=jnp.float32)
    o_ref[...] = (out + b2_ref[...]).astype(o_ref.dtype)


def _jnp_forward(x_flat, w1, b1, w2, b2):
    h = jnp.maximum(x_flat @ w1 + b1, 0.0)
    return h @ w2 + b2


def _choose_tile(n_rows: int, block_b: int) -> int:
    # Multiple of 8 (sublane rule); cap so the grid keeps >= 4 steps when possible
    # (pipeline depth + v7x megacore sharding).
    tb = min(block_b, _round_up(pl.cdiv(n_rows, 4), 8))
    return max(8, _round_up(tb, 8))


def _pallas_forward(x_full, w1, b1, w2, b2, *, tb: int, n_rows_out: int):
    """Runs the kernel over the first `n_rows_out` rows of x_full (n_rows_out % tb == 0).

    x_full is passed whole (no slicing / copying); the grid simply never touches
    rows beyond n_rows_out.
    """
    b_in, d = x_full.shape
    h = w1.shape[1]
    o = w2.shape[1]
    assert n_rows_out % tb == 0 and n_rows_out <= b_in
    grid = (n_rows_out // tb,)

    cost = pl.CostEstimate(
        flops=2 * n_rows_out * d * h + 2 * n_rows_out * h * o,
        transcendentals=0,
        bytes_accessed=(n_rows_out * d * 4          # x stream
                        + n_rows_out * o * 4        # output stream
                        + (d * h + h * o) * 4       # weights (resident, read once)
                        + (h + o) * 4),             # biases
    )

    return pl.pallas_call(
        _laban_reg_kernel,
        out_shape=jax.ShapeDtypeStruct((n_rows_out, o), jnp.float32),
        grid_spec=pltpu.PrefetchScalarGridSpec(
            num_scalar_prefetch=0,
            grid=grid,
            in_specs=[
                # x: tiled over batch, pipelined HBM->VMEM per grid step.
                pl.BlockSpec((tb, d), lambda i: (i, 0)),
                # Weights / biases: constant index_map -> stay resident in VMEM.
                pl.BlockSpec((d, h), lambda i: (0, 0)),
                pl.BlockSpec((1, h), lambda i: (0, 0)),
                pl.BlockSpec((h, o), lambda i: (0, 0)),
                pl.BlockSpec((1, o), lambda i: (0, 0)),
            ],
            out_specs=pl.BlockSpec((tb, o), lambda i: (i, 0)),
        ),
        compiler_params=pltpu.CompilerParams(
            # Batch steps are independent -> shard across v7x's 2 TensorCores.
            dimension_semantics=("parallel",),
        ),
        cost_estimate=cost,
    )(x_full, w1, b1.reshape(1, h), w2, b2.reshape(1, o))


def laban_reg_forward(x, w1, b1, w2, b2, *, block_b: int = 8192,
                      min_pallas_rows: int = 512, force_pallas: bool = False):
    """LabanReg.forward: flatten -> linear1 -> ReLU -> linear2.

    x: (B, ...) flattened to (B, D) like nn.Flatten.
    w1: (D, H), b1: (H,), w2: (H, O), b2: (O,)  (PyTorch weights pre-transposed).
    """
    B = x.shape[0]
    x_flat = x.reshape(B, -1).astype(jnp.float32)
    D, H = w1.shape
    H2, O = w2.shape
    assert x_flat.shape[1] == D and H2 == H

    w1f = w1.astype(jnp.float32)
    b1f = b1.astype(jnp.float32)
    w2f = w2.astype(jnp.float32)
    b2f = b2.astype(jnp.float32)

    # Tiny-batch fast path: launch overhead dominates; XLA's fused matmul wins.
    if not force_pallas and B < min_pallas_rows:
        return _jnp_forward(x_flat, w1f, b1f, w2f, b2f)

    tb = _choose_tile(B, block_b)
    n_full = B // tb

    if n_full == 0:
        # Forced-Pallas tiny batch: a single sublane-aligned tile (pad <= 7 rows).
        tb = _round_up(B, 8)
        x_pad = x_flat if tb == B else jnp.pad(x_flat, ((0, tb - B), (0, 0)))
        out = _pallas_forward(x_pad, w1f, b1f, w2f, b2f, tb=tb, n_rows_out=tb)
        return out[:B]

    main_rows = n_full * tb
    out_main = _pallas_forward(x_flat, w1f, b1f, w2f, b2f, tb=tb,
                               n_rows_out=main_rows)
    if main_rows == B:
        return out_main
    # Ragged tail (< tb rows): plain jnp, then concatenate (output-sized copy only).
    out_tail = _jnp_forward(x_flat[main_rows:], w1f, b1f, w2f, b2f)
    return jnp.concatenate([out_main, out_tail], axis=0)


def init_params(key, input_dim, hidden_dim, output_dim):
    """Deterministic synthetic params, shapes matching nn.Linear (pre-transposed)."""
    k1, k2, k3, k4 = jax.random.split(key, 4)
    # torch.nn.Linear stores W as (out, in); we keep (in, out) for the kernel.
    w1 = jax.random.normal(k1, (input_dim, hidden_dim), jnp.float32) * 0.05
    b1 = jax.random.normal(k2, (hidden_dim,), jnp.float32) * 0.05
    w2 = jax.random.normal(k3, (hidden_dim, output_dim), jnp.float32) * 0.05
    b2 = jax.random.normal(k4, (output_dim,), jnp.float32) * 0.05
    return w1, b1, w2, b2


if __name__ == "__main__":
    # Config consistent with the module:
    # input_dim = 64 (flattened from (4, 16)), hidden_dims[0] = 32, output_dim = 16.
    # linear3/linear4 (and relu2-4) exist in __init__ but are unused in forward.
    B, C, T = 2, 4, 16
    input_dim = C * T
    hidden_dim = 32
    output_dim = 16

    key = jax.random.PRNGKey(0)
    kx, kx2, kp = jax.random.split(key, 3)
    x = jax.random.normal(kx, (B, C, T), jnp.float32)
    w1, b1, w2, b2 = init_params(kp, input_dim, hidden_dim, output_dim)

    def ref_forward(xx):
        xf = xx.reshape(xx.shape[0], -1)
        return jnp.maximum(xf @ w1 + b1, 0.0) @ w2 + b2

    # --- 1) Force the Pallas kernel on the small demo batch (single padded tile).
    out_small = laban_reg_forward(x, w1, b1, w2, b2, force_pallas=True)
    jax.block_until_ready(out_small)
    assert out_small.shape == (B, output_dim)
    assert jnp.allclose(out_small, ref_forward(x), atol=3e-2, rtol=3e-2)

    # --- 2) Exercise the multi-step tiled path + ragged jnp tail (B=200, tb=56).
    B2 = 200
    x2 = jax.random.normal(kx2, (B2, C, T), jnp.float32)
    out_large = laban_reg_forward(x2, w1, b1, w2, b2, block_b=64, force_pallas=True)
    jax.block_until_ready(out_large)
    assert out_large.shape == (B2, output_dim)
    assert jnp.allclose(out_large, ref_forward(x2), atol=3e-2, rtol=3e-2)

    # --- 3) Tiny-batch fast path (pure jnp) matches the reference exactly.
    out_fast = laban_reg_forward(x, w1, b1, w2, b2)
    jax.block_until_ready(out_fast)
    assert jnp.allclose(out_fast, ref_forward(x), atol=1e-5, rtol=1e-5)

    print("KERNEL_OK")
</pallas_src>

<mosaic_0001>
module attributes {stable_mosaic.version = 11 : i64} {
  func.func @_laban_reg_kernel(%arg0: i32, %arg1: memref<8x64xf32, #tpu.memory_space<vmem>>, %arg2: memref<64x32xf32, #tpu.memory_space<vmem>>, %arg3: memref<1x32xf32, #tpu.memory_space<vmem>>, %arg4: memref<32x16xf32, #tpu.memory_space<vmem>>, %arg5: memref<1x16xf32, #tpu.memory_space<vmem>>, %arg6: memref<8x16xf32, #tpu.memory_space<vmem>>) attributes {dimension_semantics = [#tpu.dimension_semantics<parallel>], iteration_bounds = array<i64: 1>, scalar_prefetch = 0 : i64, scratch_operands = 0 : i64, tpu.core_type = #tpu.core_type<tc>, window_params = [{transform_indices = @transform_0, window_bounds = array<i64: 8, 64>}, {pipeline_mode = #tpu.pipeline_mode<synchronous>, transform_indices = @transform_1, window_bounds = array<i64: 64, 32>}, {pipeline_mode = #tpu.pipeline_mode<synchronous>, transform_indices = @transform_2, window_bounds = array<i64: 1, 32>}, {pipeline_mode = #tpu.pipeline_mode<synchronous>, transform_indices = @transform_3, window_bounds = array<i64: 32, 16>}, {pipeline_mode = #tpu.pipeline_mode<synchronous>, transform_indices = @transform_4, window_bounds = array<i64: 1, 16>}, {transform_indices = @transform_5, window_bounds = array<i64: 8, 16>}]} {
    %c0 = arith.constant 0 : index
    %c0_0 = arith.constant 0 : index
    %0 = vector.load %arg1[%c0, %c0_0] : memref<8x64xf32, #tpu.memory_space<vmem>>, vector<8x64xf32>
    %c0_1 = arith.constant 0 : index
    %c0_2 = arith.constant 0 : index
    %1 = vector.load %arg2[%c0_1, %c0_2] : memref<64x32xf32, #tpu.memory_space<vmem>>, vector<64x32xf32>
    %cst = arith.constant dense<0.000000e+00> : vector<8x32xf32>
    %2 = tpu.matmul %0, %1, %cst {dimension_numbers = #tpu.dot_dimension_numbers<[1], [0], [0], [1], [0, 0, 1, 1], [], []>} : vector<8x64xf32>, vector<64x32xf32>, vector<8x32xf32> -> vector<8x32xf32>
    %c0_3 = arith.constant 0 : index
    %c0_4 = arith.constant 0 : index
    %3 = vector.load %arg3[%c0_3, %c0_4] : memref<1x32xf32, #tpu.memory_space<vmem>>, vector<1x32xf32>
    %4 = vector.broadcast %3 : vector<1x32xf32> to vector<8x32xf32>
    %5 = arith.addf %2, %4 : vector<8x32xf32>
    %cst_5 = arith.constant 0.000000e+00 : f32
    %6 = vector.broadcast %cst_5 : f32 to vector<8x32xf32>
    %7 = arith.maximumf %5, %6 : vector<8x32xf32>
    %c0_6 = arith.constant 0 : index
    %c0_7 = arith.constant 0 : index
    %8 = vector.load %arg4[%c0_6, %c0_7] : memref<32x16xf32, #tpu.memory_space<vmem>>, vector<32x16xf32>
    %cst_8 = arith.constant dense<0.000000e+00> : vector<8x16xf32>
    %9 = tpu.matmul %7, %8, %cst_8 {dimension_numbers = #tpu.dot_dimension_numbers<[1], [0], [0], [1], [0, 0, 1, 1], [], []>} : vector<8x32xf32>, vector<32x16xf32>, vector<8x16xf32> -> vector<8x16xf32>
    %c0_9 = arith.constant 0 : index
    %c0_10 = arith.constant 0 : index
    %10 = vector.load %arg5[%c0_9, %c0_10] : memref<1x16xf32, #tpu.memory_space<vmem>>, vector<1x16xf32>
    %11 = vector.broadcast %10 : vector<1x16xf32> to vector<8x16xf32>
    %12 = arith.addf %9, %11 : vector<8x16xf32>
    %c0_11 = arith.constant 0 : index
    %c0_12 = arith.constant 0 : index
    %13 = vector.load %arg6[%c0_11, %c0_12] : memref<8x16xf32, #tpu.memory_space<vmem>>, vector<8x16xf32>
    tpu.vector_store %arg6[%c0_11, %c0_12], %12 {strides = array<i32>} : memref<8x16xf32, #tpu.memory_space<vmem>>, vector<8x16xf32>,
    return
  }
  func.func @transform_0(%arg0: i32) -> (i32, i32) {
    %c0_i32 = arith.constant 0 : i32
    %c0_i32_0 = arith.constant 0 : i32
    return %arg0, %c0_i32 : i32, i32
  }
  func.func @transform_1(%arg0: i32) -> (i32, i32) {
    %c0_i32 = arith.constant 0 : i32
    %c0_i32_0 = arith.constant 0 : i32
    %c0_i32_1 = arith.constant 0 : i32
    return %c0_i32, %c0_i32_0 : i32, i32
  }
  func.func @transform_2(%arg0: i32) -> (i32, i32) {
    %c0_i32 = arith.constant 0 : i32
    %c0_i32_0 = arith.constant 0 : i32
    %c0_i32_1 = arith.constant 0 : i32
    return %c0_i32, %c0_i32_0 : i32, i32
  }
  func.func @transform_3(%arg0: i32) -> (i32, i32) {
    %c0_i32 = arith.constant 0 : i32
    %c0_i32_0 = arith.constant 0 : i32
    %c0_i32_1 = arith.constant 0 : i32
    return %c0_i32, %c0_i32_0 : i32, i32
  }
  func.func @transform_4(%arg0: i32) -> (i32, i32) {
    %c0_i32 = arith.constant 0 : i32
    %c0_i32_0 = arith.constant 0 : i32
    %c0_i32_1 = arith.constant 0 : i32
    return %c0_i32, %c0_i32_0 : i32, i32
  }
  func.func @transform_5(%arg0: i32) -> (i32, i32) {
    %c0_i32 = arith.constant 0 : i32
    %c0_i32_0 = arith.constant 0 : i32
    return %arg0, %c0_i32 : i32, i32
  }
}

</mosaic_0001>

<bundles_post_ra>
// kernel: tpu_custom_call.1
= control target key start
LH: loop header
LB: loop body
LE: loop exit
PB: predicated region body
PF: predicated region fallthrough
CT: control target
= control target key end

     0   :  { %v307_v3 = vmov 0.0|0.0   ;;  %vm308_vm0 = vmmov 0   ;;  %v309_v6 = vmov 0.0   ;;  %s398_s0 = inlined_call_operand.vmem [shape: f32[8,64], index: 0, kind: input, shape index: {}]   ;;  %s399_s1 = inlined_call_operand.vmem [shape: f32[64,32], index: 1, kind: input, shape index: {}]   ;;  %s400_s2 = inlined_call_operand.vmem [shape: f32[1,32], index: 2, kind: input, shape index: {}]   ;;  %s401_s3 = inlined_call_operand.vmem [shape: f32[32,16], index: 3, kind: input, shape index: {}]   ;;  %s402_s4 = inlined_call_operand.vmem [shape: f32[1,16], index: 4, kind: input, shape index: {}]   ;;  %s403_s5 = inlined_call_operand.hbm [shape: f32[8,16], index: 5, kind: output, shape index: {}]  }
   0x1   :  { %v22_v0 = vld [vmem:[%s399_s1] sm:$0xff]  ;;  %v23_v1 = vld [vmem:[%s399_s1 + $0x8] sm:$0xff]  ;;  %v24_v2 = vld [vmem:[%s399_s1 + $0x10] sm:$0xff]  ;;  %261 = vmatprep.subr.bf16.mxu0 %v307_v3  ;;  %247 = vmatprep.mubr.msk.f32.mxu0 %vm308_vm0, %v309_v6 }
   0x2   :  { %v262_v4 = vpack.c.bf16 %v23_v1, %v22_v0  ;;  %v25_v5 = vld [vmem:[%s399_s1 + $0x18] sm:$0xff]  ;;  %273 = vmatprep.subr.bf16.mxu1 %v307_v3  ;;  %258 = vmatprep.mubr.msk.f32.mxu1 %vm308_vm0, %v309_v6  ;;  %v112_v8 = vld [vmem:[%s401_s3] sm:$0xff]  ;;  %v113_v9 = vld [vmem:[%s401_s3 + $0x8] sm:$0xff] }
   0x3   :  { %v265_v7 = vpack.c.bf16 %v25_v5, %v24_v2  ;;  %v26_v10 = vld [vmem:[%s399_s1 + $0x20] sm:$0xff]  ;;  %v27_v11 = vld [vmem:[%s399_s1 + $0x28] sm:$0xff]  ;;  %v274_v12 = vpack.c.bf16 %v113_v9, %v112_v8 }
   0x4   :  { %263 = vmatpush3.bf16.msra.mxu0 %v262_v4 }
   0x5   :  { %264 = vmatprep.subr.bf16.mxu0 %v307_v3 }
   0x6   :  { %10 = vsyncpa [#allocation3], 0  ;;  %275 = vmatpush3.bf16.msra.mxu1 %v274_v12  ;;  %v268_v13 = vpack.c.bf16 %v27_v11, %v26_v10  ;;  %v28_v14 = vld [vmem:[%s399_s1 + $0x30] sm:$0xff]  ;;  %v29_v15 = vld [vmem:[%s399_s1 + $0x38] sm:$0xff]  ;;  %vm37_vm1 = vcmask 523264   ;;  %vm123_vm2 = vcmask 261120  }
   0x7   :  { %276 = vmatprep.subr.bf16.mxu1 %v307_v3  ;;  %v271_v16 = vpack.c.bf16 %v29_v15, %v28_v14  ;;  %v21_v17 = vld [vmem:[%s398_s0] sm:$0xff]  ;;  %v114_v18 = vld [vmem:[%s401_s3 + $0x10] sm:$0xff]  ;;  %v115_v19 = vld [vmem:[%s401_s3 + $0x18] sm:$0xff]  ;;  %s310_s21 = smov [#allocation2]   ;;  %vm197_vm3 = vcmask 130048  }
   0x8   :  { %266 = vmatpush3.bf16.msra.mxu0 %v265_v7  ;;  %v277_v20 = vpack.c.bf16 %v115_v19, %v114_v18  ;;  %v213_v21 = vld [vmem:[%s400_s2] ss:$0 sm:$0xff]  ;;  %s205_s22 = sshll.u32 %s310_s21, 4  ;;  %s206_s22 = int_to_ptr.vmem [resolvable:$true] %s205_s22 }
   0x9   :  { %267 = vmatprep.subr.bf16.mxu0 %v307_v3  ;;  %v215_v26 = vld [vmem:[%s402_s4] ss:$0 sm:$0xff]  ;;  %s283_s3 = scalar_lea.vmem %s206_s22, 128  ;;  %p288_p1 = scmp.lt.s32.totalorder %s206_s22, %s206_s22 }
   0xa   :  { %278 = vmatpush3.bf16.msra.mxu1 %v277_v20  ;;  %p284_p0 = scmp.ne.s32.totalorder %s206_s22, %s283_s3  ;;  %p289_p2 = scmp.lt.s32.totalorder %s283_s3, %s283_s3 }
   0xc   :  { %269 = vmatpush3.bf16.msra.mxu0 %v268_v13  ;;  %p290_p3 = por %p289_p2, %p288_p1 }
   0xd   :  { %270 = vmatprep.subr.bf16.mxu0 %v307_v3 }
   0xe   :  { %p291_p4 = pnand %p290_p3, %p284_p0 }
  0x10   :  { %272 = vmatpush3.bf16.msra.mxu0 %v271_v16 }
  0x13   :  { %248 = vmatmul.mubr.msk.f32.vlgmr.msra.gmra.mrb[0].mxu0 %vm37_vm1, %v21_v17 }
  0xe6   :  { %v107_v22 = vpop.f32.mrb[0].mxu0 }
  0xe7   :  { %v108_v23 = vadd.f32 %v213_v21, %v107_v22  ;;  %v249_v24 = vpop.f32.mrb[1].mxu0 }
  0xe9   :  { %v111_v25 = vmax.f32 %v108_v23, 0.0 }
  0xeb   :  { %259 = vmatmul.mubr.msk.f32.vlgmr.msra.gmra.mrb[0].mxu1 %vm123_vm2, %v111_v25 }
 0x1be   :  { %v193_v27 = vpop.f32.mrb[0].mxu1 }
 0x1bf   :  { %v194_v28 = vadd.f32 %v215_v26, %v193_v27  ;;  %v260_v29 = vpop.f32.mrb[1].mxu1 }
 0x1c1   :  { %198 = vst.msk [vmem:[#allocation2] sm:$0xff] %vm197_vm3, %v194_v28 }
 0x1c2   :  { %294 = shalt.err (!%p291_p4)
}
 0x1c3   :  { %s295_s24 = scalar_lea.hbm %s403_s5, 128 }
 0x1c4   :  { %p296_p5 = scmp.ne.s32.totalorder %s403_s5, %s295_s24  ;;  %p299_p6 = scmp.lt.u32.totalorder %s295_s24, %s403_s5 }
 0x1c6   :  { %p301_p7 = pnand %p299_p6, %p296_p5 }
 0x1c8   :  { %304 = shalt.err (!%p301_p7)
}
 0x1c9   :  { %208 = dma.vmem_to_hbm [thread:$0]  %s206_s22, 128, %s403_s5, [#allocation3]  }
 0x1ca   :  { %305 = dma.done.wait [#allocation3], 128  }
 0x1cb   :  { %306 = vsyncadd [#allocation3], 4294967168 }
 0x1cc   :  { %212 = vsyncpa [#allocation3], 1 }

</bundles_post_ra>
